<compile_context>
chip_gen: v5e
topology: v5e:2x2
jax: 0.10.0
libtpu: 0.0.40
codegen_flags: <defaults>
</compile_context>

<pallas_src>
import functools

import jax
import jax.numpy as jnp
from jax.experimental import pallas as pl
from jax.experimental.pallas import tpu as pltpu

# Hyper-parameters matching the PyTorch module defaults.
GAMMA_NEG = 4.0
GAMMA_POS = 1.0
CLIP = 0.05
EPS = 1e-8


def _int_pow(x, n: int):
    """x**n for a small non-negative integer n via multiplies (no EUP log/exp)."""
    if n == 0:
        return jnp.ones_like(x)
    result = None
    p = x
    while n > 0:
        if n & 1:
            result = p if result is None else result * p
        n >>= 1
        if n:
            p = p * p
    return result


def _asl_kernel(logits_ref, targets_ref, partial_ref, *, gamma_neg, gamma_pos,
                clip, eps, n_rows, hard_targets, row_tail, out_rows_8):
    rb, cb = logits_ref.shape

    x = logits_ref[...].astype(jnp.float32)
    # Sigmoid in its single-EUP tanh form (avoids exp + reciprocal lowering).
    xs_pos = 0.5 * jnp.tanh(0.5 * x) + 0.5
    xs_neg = 1.0 - xs_pos
    if clip is not None and clip > 0:
        xs_neg = jnp.minimum(xs_neg + clip, 1.0)

    int_gammas = (float(gamma_pos).is_integer() and float(gamma_neg).is_integer()
                  and gamma_pos >= 0 and gamma_neg >= 0)

    if hard_targets:
        # Targets are {0,1}: keep them in their native dtype (no f32 upcast),
        # one log per element, integer powers via multiplies.
        t_raw = targets_ref[...]
        t_pos = t_raw if t_raw.dtype == jnp.bool_ else (t_raw != 0)
        sel = jnp.where(t_pos, xs_pos, xs_neg)
        loss = jnp.log(jnp.maximum(sel, eps))
        if gamma_neg > 0 or gamma_pos > 0:
            base = 1.0 - sel
            if int_gammas:
                w = jnp.where(t_pos,
                              _int_pow(base, int(gamma_pos)),
                              _int_pow(base, int(gamma_neg)))
            else:
                # Clamp base: jnp.power = exp(g*log(base)) NaNs at base==0,g==0.
                w = jnp.power(jnp.maximum(base, 1e-12),
                              jnp.where(t_pos, gamma_pos, gamma_neg))
            loss = loss * w
    else:
        # General (soft-target) fallback: matches the PyTorch math.
        t = targets_ref[...].astype(jnp.float32)
        anti_t = 1.0 - t
        loss = t * jnp.log(jnp.maximum(xs_pos, eps))
        loss = loss + anti_t * jnp.log(jnp.maximum(xs_neg, eps))
        if gamma_neg > 0 or gamma_pos > 0:
            base = 1.0 - xs_pos * t - xs_neg * anti_t
            # Clamp avoids 0**0 -> NaN when sigmoid saturates (torch gives 1).
            w = jnp.power(jnp.maximum(base, 1e-12),
                          gamma_pos * t + gamma_neg * anti_t)
            loss = loss * w

    def reduce_rows(a):
        # Sublane reduction without touching the XLU: add groups of 8 rows.
        if not out_rows_8:
            return jnp.sum(a, axis=0, keepdims=True)
        if rb == 8:
            return a
        acc = a[0:8, :]
        for g in range(1, rb // 8):
            acc = acc + a[8 * g:8 * (g + 1), :]
        return acc

    # Interior blocks: fully unmasked path (no iota / compares / selects).
    partial_ref[...] = reduce_rows(loss)

    if row_tail:
        # Only the last row-block can contain rows past the batch; recompute a
        # masked partial there. Column tails never need masking: garbage class
        # columns land in padded output columns that the wrapper slices off.
        i = pl.program_id(0)

        @pl.when(i == pl.num_programs(0) - 1)
        def _():
            row_ids = jax.lax.broadcasted_iota(jnp.int32, (rb, cb), 0) + i * rb
            masked = jnp.where(row_ids < n_rows, loss, 0.0)
            partial_ref[...] = reduce_rows(masked)


@functools.lru_cache(maxsize=1)
def _tpu_defaults():
    """Generation-specific block / VMEM budgets."""
    kind = ""
    try:
        kind = jax.devices()[0].device_kind.lower()
    except Exception:
        pass
    if ("v5 lite" in kind or "v5e" in kind or "v5litepod" in kind
            or "v5p" in kind or "v4" in kind or "v6" in kind):
        # 128 MiB physical VMEM, single TensorCore per chip: big tiles.
        return {"block_bytes": 8 << 20,
                "vmem_limit_bytes": 96 * 1024 * 1024,
                "min_grid_steps": 1}
    if "7" in kind:
        # v7x: 64 MiB VMEM per TC, 2 TCs -> smaller tiles, keep the grid wide
        # enough that megacore sharding has work for both cores.
        return {"block_bytes": 4 << 20,
                "vmem_limit_bytes": 48 * 1024 * 1024,
                "min_grid_steps": 8}
    # Unknown chip: stay inside the default scoped-VMEM limit.
    return {"block_bytes": 2 << 20,
            "vmem_limit_bytes": None,
            "min_grid_steps": 2}


def _choose_blocks(batch, n_classes, block_bytes, itemsize, sublane_mult,
                   min_steps):
    """Pick an (rb, cb) tile ~block_bytes of the widest input dtype."""
    col_cap = 8192               # multiple of 128; blocks the class dim if huge
    cb = n_classes if n_classes <= col_cap else col_cap
    rb = max(1, block_bytes // (cb * itemsize))
    if rb >= batch:
        rb = batch               # full batch dim -> always a legal block
    else:
        rb = max(sublane_mult, (rb // sublane_mult) * sublane_mult)

    def n_steps(r, c):
        return pl.cdiv(batch, r) * pl.cdiv(n_classes, c)

    # Grid-collapse guard (v7x): prefer splitting rows, then classes.
    while n_steps(rb, cb) < min_steps:
        if rb > sublane_mult:
            rb = max(sublane_mult, ((rb // 2) // sublane_mult) * sublane_mult)
        elif cb > 128:
            cb = max(128, ((cb // 2) // 128) * 128)
        else:
            break
    return rb, cb


def asymmetric_loss(logits, targets, *, gamma_neg=GAMMA_NEG, gamma_pos=GAMMA_POS,
                    clip=CLIP, eps=EPS, hard_targets=True,
                    block_bytes=None, vmem_limit_bytes=None):
    """Returns -sum(ASL elementwise loss) as a scalar (PyTorch forward semantics).

    Set hard_targets=False if targets are soft (not strictly {0,1}).
    For best throughput pass bf16 logits and int8/bool targets.
    """
    assert logits.shape == targets.shape and logits.ndim == 2
    B, C = logits.shape

    defaults = _tpu_defaults()
    if block_bytes is None:
        block_bytes = defaults["block_bytes"]
    if vmem_limit_bytes is None:
        vmem_limit_bytes = defaults["vmem_limit_bytes"]
    min_steps = defaults["min_grid_steps"]

    item_l = logits.dtype.itemsize
    item_t = targets.dtype.itemsize
    itemsize = max(item_l, item_t)
    # Sublane multiple for the most packed input dtype (8/16/32 for 4/2/1 B).
    sublane_mult = max(8, 32 // max(1, min(item_l, item_t)))

    rb, cb = _choose_blocks(B, C, block_bytes, itemsize, sublane_mult, min_steps)
    grid = (pl.cdiv(B, rb), pl.cdiv(C, cb))

    row_tail = (B % rb) != 0
    out_rows_8 = (rb % 8 == 0)            # tiny ragged batches fall back to 1 row
    ob = 8 if out_rows_8 else 1
    out_rows = grid[0] * ob
    out_cols = grid[1] * cb               # pad class dim -> no OOB output writes

    kernel = functools.partial(
        _asl_kernel, gamma_neg=gamma_neg, gamma_pos=gamma_pos, clip=clip,
        eps=eps, n_rows=B, hard_targets=hard_targets, row_tail=row_tail,
        out_rows_8=out_rows_8)

    partials = pl.pallas_call(
        kernel,
        out_shape=jax.ShapeDtypeStruct((out_rows, out_cols), jnp.float32),
        grid_spec=pltpu.PrefetchScalarGridSpec(
            num_scalar_prefetch=0,
            grid=grid,
            in_specs=[
                pl.BlockSpec((rb, cb), lambda i, j: (i, j)),
                pl.BlockSpec((rb, cb), lambda i, j: (i, j)),
            ],
            out_specs=pl.BlockSpec((ob, cb), lambda i, j: (i, j)),
        ),
        compiler_params=pltpu.CompilerParams(
            dimension_semantics=("parallel", "parallel"),
            vmem_limit_bytes=vmem_limit_bytes),
    )(logits, targets)

    # Drop the padded class columns (boundary column blocks), then do the tiny
    # cross-block reduce in plain JAX (grid stays fully parallel for megacore).
    return -jnp.sum(partials[:, :C])


def asymmetric_loss_ref(logits, targets, *, gamma_neg=GAMMA_NEG,
                        gamma_pos=GAMMA_POS, clip=CLIP, eps=EPS):
    """Pure-JAX reference of the PyTorch forward."""
    t = targets.astype(jnp.float32)
    anti_t = 1.0 - t
    xs_pos = jax.nn.sigmoid(logits.astype(jnp.float32))
    xs_neg = 1.0 - xs_pos
    if clip is not None and clip > 0:
        xs_neg = jnp.minimum(xs_neg + clip, 1.0)
    loss = t * jnp.log(jnp.maximum(xs_pos, eps))
    loss = loss + anti_t * jnp.log(jnp.maximum(xs_neg, eps))
    if gamma_neg > 0 or gamma_pos > 0:
        xp = xs_pos * t
        xn = xs_neg * anti_t
        w = jnp.power(1.0 - xp - xn, gamma_pos * t + gamma_neg * anti_t)
        loss = loss * w
    return -jnp.sum(loss)


# TODO(synk): disable_torch_grad_focal_loss only changes autograd behavior in
# PyTorch; the forward value is identical, so it has no kernel equivalent.

if __name__ == "__main__":
    key = jax.random.PRNGKey(0)
    k1, k2, k3, k4 = jax.random.split(key, 4)

    # Test 1: hard {0,1} targets, f32 (small canonical shape).
    B, C = 8, 128
    logits = jax.random.normal(k1, (B, C), dtype=jnp.float32) * 2.0
    targets = (jax.random.uniform(k2, (B, C)) > 0.7).astype(jnp.float32)
    out = jax.block_until_ready(asymmetric_loss(logits, targets))
    ref = asymmetric_loss_ref(logits, targets)
    assert jnp.allclose(out, ref, rtol=1e-4, atol=1e-4), (out, ref)

    # Test 2: ragged batch + tiny block budget -> row-tail pl.when path.
    B2, C2 = 13, 200
    logits2 = jax.random.normal(k3, (B2, C2), dtype=jnp.float32) * 3.0
    targets2 = (jax.random.uniform(k4, (B2, C2)) > 0.6).astype(jnp.float32)
    out2 = jax.block_until_ready(
        asymmetric_loss(logits2, targets2, block_bytes=8 * C2 * 4))
    ref2 = asymmetric_loss_ref(logits2, targets2)
    assert jnp.allclose(out2, ref2, rtol=1e-4, atol=1e-4), (out2, ref2)

    # Test 3: bf16 logits + int8 hard targets (low-HBM-traffic recommended path).
    targets_i8 = targets.astype(jnp.int8)
    out3 = jax.block_until_ready(
        asymmetric_loss(logits.astype(jnp.bfloat16), targets_i8))
    ref3 = asymmetric_loss_ref(logits.astype(jnp.bfloat16), targets_i8)
    assert jnp.allclose(out3, ref3, rtol=1e-4, atol=1e-4), (out3, ref3)

    # Test 4: soft targets via the general fallback path (two logs + pow).
    soft_t = jax.random.uniform(k2, (B, C), dtype=jnp.float32)
    out4 = jax.block_until_ready(
        asymmetric_loss(logits, soft_t, hard_targets=False))
    ref4 = asymmetric_loss_ref(logits, soft_t)
    assert jnp.allclose(out4, ref4, rtol=1e-4, atol=1e-4), (out4, ref4)

    # Test 5: tiny batch not a multiple of 8 -> (1, cb) partial-output fallback.
    B5, C5 = 5, 96
    logits5 = jax.random.normal(k3, (B5, C5), dtype=jnp.float32)
    targets5 = (jax.random.uniform(k4, (B5, C5)) > 0.5).astype(jnp.float32)
    out5 = jax.block_until_ready(asymmetric_loss(logits5, targets5))
    ref5 = asymmetric_loss_ref(logits5, targets5)
    assert jnp.allclose(out5, ref5, rtol=1e-4, atol=1e-4), (out5, ref5)

    print("KERNEL_OK")
</pallas_src>

<mosaic_0001>
module attributes {stable_mosaic.version = 11 : i64} {
  func.func @_asl_kernel(%arg0: i32, %arg1: i32, %arg2: memref<8x128xf32, #tpu.memory_space<vmem>>, %arg3: memref<8x128xf32, #tpu.memory_space<vmem>>, %arg4: memref<8x128xf32, #tpu.memory_space<vmem>>) attributes {dimension_semantics = [#tpu.dimension_semantics<parallel>, #tpu.dimension_semantics<parallel>], iteration_bounds = array<i64: 1, 1>, scalar_prefetch = 0 : i64, scratch_operands = 0 : i64, tpu.core_type = #tpu.core_type<tc>, window_params = [{transform_indices = @transform_0, window_bounds = array<i64: 8, 128>}, {transform_indices = @transform_1, window_bounds = array<i64: 8, 128>}, {transform_indices = @transform_2, window_bounds = array<i64: 8, 128>}]} {
    %c0 = arith.constant 0 : index
    %c0_0 = arith.constant 0 : index
    %0 = vector.load %arg2[%c0, %c0_0] : memref<8x128xf32, #tpu.memory_space<vmem>>, vector<8x128xf32>
    %cst = arith.constant 5.000000e-01 : f32
    %1 = vector.broadcast %cst : f32 to vector<8x128xf32>
    %2 = arith.mulf %1, %0 : vector<8x128xf32>
    %3 = math.tanh %2 : vector<8x128xf32>
    %cst_1 = arith.constant 5.000000e-01 : f32
    %4 = vector.broadcast %cst_1 : f32 to vector<8x128xf32>
    %5 = arith.mulf %4, %3 : vector<8x128xf32>
    %cst_2 = arith.constant 5.000000e-01 : f32
    %6 = vector.broadcast %cst_2 : f32 to vector<8x128xf32>
    %7 = arith.addf %5, %6 : vector<8x128xf32>
    %cst_3 = arith.constant 1.000000e+00 : f32
    %8 = vector.broadcast %cst_3 : f32 to vector<8x128xf32>
    %9 = arith.subf %8, %7 : vector<8x128xf32>
    %cst_4 = arith.constant 5.000000e-02 : f32
    %10 = vector.broadcast %cst_4 : f32 to vector<8x128xf32>
    %11 = arith.addf %9, %10 : vector<8x128xf32>
    %cst_5 = arith.constant 1.000000e+00 : f32
    %12 = vector.broadcast %cst_5 : f32 to vector<8x128xf32>
    %13 = arith.minimumf %11, %12 : vector<8x128xf32>
    %c0_6 = arith.constant 0 : index
    %c0_7 = arith.constant 0 : index
    %14 = vector.load %arg3[%c0_6, %c0_7] : memref<8x128xf32, #tpu.memory_space<vmem>>, vector<8x128xf32>
    %cst_8 = arith.constant 0.000000e+00 : f32
    %15 = vector.broadcast %cst_8 : f32 to vector<8x128xf32>
    %16 = arith.cmpf one, %14, %15 : vector<8x128xf32>
    %17 = arith.select %16, %7, %13 : vector<8x128xi1>, vector<8x128xf32>
    %cst_9 = arith.constant 9.99999993E-9 : f32
    %18 = vector.broadcast %cst_9 : f32 to vector<8x128xf32>
    %19 = arith.maximumf %17, %18 : vector<8x128xf32>
    %20 = math.log %19 : vector<8x128xf32>
    %cst_10 = arith.constant 1.000000e+00 : f32
    %21 = vector.broadcast %cst_10 : f32 to vector<8x128xf32>
    %22 = arith.subf %21, %17 : vector<8x128xf32>
    %23 = arith.mulf %22, %22 : vector<8x128xf32>
    %24 = arith.mulf %23, %23 : vector<8x128xf32>
    %25 = arith.select %16, %22, %24 : vector<8x128xi1>, vector<8x128xf32>
    %26 = arith.mulf %20, %25 : vector<8x128xf32>
    %c0_11 = arith.constant 0 : index
    %c0_12 = arith.constant 0 : index
    %27 = vector.load %arg4[%c0_11, %c0_12] : memref<8x128xf32, #tpu.memory_space<vmem>>, vector<8x128xf32>
    tpu.vector_store %arg4[%c0_11, %c0_12], %26 {strides = array<i32>} : memref<8x128xf32, #tpu.memory_space<vmem>>, vector<8x128xf32>,
    return
  }
  func.func @transform_0(%arg0: i32, %arg1: i32) -> (i32, i32) {
    %c0_i32 = arith.constant 0 : i32
    return %arg0, %arg1 : i32, i32
  }
  func.func @transform_1(%arg0: i32, %arg1: i32) -> (i32, i32) {
    %c0_i32 = arith.constant 0 : i32
    return %arg0, %arg1 : i32, i32
  }
  func.func @transform_2(%arg0: i32, %arg1: i32) -> (i32, i32) {
    %c0_i32 = arith.constant 0 : i32
    return %arg0, %arg1 : i32, i32
  }
}

</mosaic_0001>

<bundles_post_ra>
// kernel: tpu_custom_call.1
= control target key start
LH: loop header
LB: loop body
LE: loop exit
PB: predicated region body
PF: predicated region fallthrough
CT: control target
= control target key end

     0   :  { %7 = vsyncpa [#allocation3], 0  ;;  %s190_s0 = inlined_call_operand.hbm [shape: f32[8,128], index: 0, kind: input, shape index: {}]   ;;  %s191_s1 = inlined_call_operand.hbm [shape: f32[8,128], index: 1, kind: input, shape index: {}]   ;;  %s192_s2 = inlined_call_operand.hbm [shape: f32[8,128], index: 2, kind: output, shape index: {}]  }
   0x1   :  { %8 = vsyncpa [#allocation6], 0 }
   0x2   :  { %9 = vsyncpa [#allocation4], 0  ;;  %s15_s11 = sshll.u32 %s190_s0, 4  ;;  %s163_s12 = smov [#allocation2]   ;;  %s16_s11 = int_to_ptr.hbm [resolvable:$true] %s15_s11 }
   0x3   :  { %s17_s13 = sshll.u32 %s163_s12, 4  ;;  %s26_s16 = sshll.u32 %s191_s1, 4  ;;  %s18_s13 = int_to_ptr.vmem [resolvable:$true] %s17_s13  ;;  %s27_s16 = int_to_ptr.hbm [resolvable:$true] %s26_s16 }
   0x4   :  { %20 = dma.hbm_to_vmem [thread:$0]  %s16_s11, 128, %s18_s13, [#allocation3]  }
   0x5   :  { %s164_s17 = smov [#allocation5]  }
   0x6   :  { %s28_s18 = sshll.u32 %s164_s17, 4  ;;  %s29_s18 = int_to_ptr.vmem [resolvable:$true] %s28_s18 }
   0x7   :  { %31 = dma.hbm_to_vmem [thread:$0]  %s27_s16, 128, %s29_s18, [#allocation6]  }
   0x8   :  { %157 = dma.done.wait [#allocation3], 128  }
   0x9   :  { %158 = vsyncadd [#allocation3], 4294967168 }
   0xa   :  { %159 = dma.done.wait [#allocation6], 128  }
   0xb   :  { %160 = vsyncadd [#allocation6], 4294967168  ;;  %v40_v0 = vld [vmem:[#allocation2] sm:$0xff]  ;;  %v48_v6 = vld [vmem:[#allocation5] sm:$0xff]  ;;  %s165_s0 = smov [#allocation7]   ;;  %s67_s21 = sshll.u32 %s192_s2, 4  ;;  %s68_s21 = int_to_ptr.hbm [resolvable:$true] %s67_s21 }
   0xc   :  { %v41_v1 = vmul.f32 0.5, %v40_v0  ;;  %vm49_vm0 = vcmp.ne.f32.partialorder %v48_v6, 0.0  ;;  %s65_s1 = sshll.u32 %s165_s0, 4  ;;  %s66_s1 = int_to_ptr.vmem [resolvable:$true] %s65_s1 }
   0xe   :  { %81 = vtanh.f32 %v41_v1 }
  0x14   :  { %v82_v2 = vpop.eup %81 }
  0x15   :  { %v43_v3 = vmul.f32 0.5, %v82_v2 }
  0x17   :  { %v44_v4 = vadd.f32 0.5, %v43_v3 }
  0x19   :  { %v45_v5 = vsub.f32 1.0, %v44_v4 }
  0x1b   :  { %v46_v7 = vadd.f32 0.05, %v45_v5 }
  0x1d   :  { %v47_v8 = vmin.f32 %v46_v7, 1.0 }
  0x1f   :  { %v50_v9 = vsel %vm49_vm0, %v44_v4, %v47_v8 }
  0x20   :  { %v51_v10 = vmax.f32 %v50_v9, 1e-08  ;;  %v54_v11 = vsub.f32 1.0, %v50_v9 }
  0x22   :  { %83 = vlog2.f32 %v51_v10  ;;  %v55_v12 = vmul.f32 %v54_v11, %v54_v11 }
  0x24   :  { %v56_v13 = vmul.f32 %v55_v12, %v55_v12 }
  0x26   :  { %v57_v15 = vsel %vm49_vm0, %v54_v11, %v56_v13 }
  0x28   :  { %v84_v14 = vpop.eup %83 }
  0x29   :  { %v53_v16 = vmul.f32 0.6931472, %v84_v14 }
  0x2b   :  { %v58_v17 = vmul.f32 %v57_v15, %v53_v16 }
  0x2d   :  { %59 = vst [vmem:[#allocation7] sm:$0xff] %v58_v17 }
  0x2e   :  { %70 = dma.vmem_to_hbm [thread:$0]  %s66_s1, 128, %s68_s21, [#allocation4]  }
  0x2f   :  { %161 = dma.done.wait [#allocation4], 128  }
  0x30   :  { %162 = vsyncadd [#allocation4], 4294967168 }
  0x31   :  { %75 = vsyncpa [#allocation3], 1 }
  0x32   :  { %76 = vsyncpa [#allocation6], 1 }
  0x33   :  { %77 = vsyncpa [#allocation4], 1 }

</bundles_post_ra>
